<compile_context>
chip_gen: v5e
topology: v5e:2x2
jax: 0.10.0
libtpu: 0.0.40
codegen_flags: <defaults>
</compile_context>

<pallas_src>
import functools

import jax
import jax.numpy as jnp
from jax import lax
from jax.experimental import pallas as pl
from jax.experimental.pallas import tpu as pltpu


# ----------------------------------------------------------------------------
# Tiling helper: largest multiple of `base` that divides `dim` and is <= cap.
# Falls back to the full extent when `dim` is not a multiple of `base`
# (satisfies the (8,128) rule via full-extent blocks for odd shapes).
# ----------------------------------------------------------------------------
def _pick_tile(dim, base, cap):
    if dim % base != 0:
        return dim
    best = base
    t = base
    limit = min(dim, cap)
    while t <= limit:
        if dim % t == 0:
            best = t
        t += base
    return best


# ----------------------------------------------------------------------------
# Content loss:  sum((x - t)^2) / numel   -- tiled partial-sum kernel.
# ----------------------------------------------------------------------------
def _content_partial_kernel(x_ref, t_ref, o_ref):
    d = x_ref[...] - t_ref[...]
    o_ref[0, 0] = jnp.sum(d * d)


def content_loss(feat, target):
    """feat, target: (B, C, H, W) float32 -> scalar loss."""
    B, C, H, W = feat.shape
    R, M = B * C, H * W
    xf = feat.reshape(R, M).astype(jnp.float32)
    tf = target.reshape(R, M).astype(jnp.float32)

    # block <= 256 x 2048 f32 = 2 MiB; x2 inputs x2 buffers = 8 MiB (fits v5e/v7x defaults)
    tr = _pick_tile(R, 8, 256)
    tc = _pick_tile(M, 128, 2048)
    gr, gc = R // tr, M // tc

    partials = pl.pallas_call(
        _content_partial_kernel,
        out_shape=jax.ShapeDtypeStruct((gr, gc), jnp.float32),
        grid=(gr, gc),
        in_specs=[pl.BlockSpec((tr, tc), lambda i, j: (i, j)),
                  pl.BlockSpec((tr, tc), lambda i, j: (i, j))],
        out_specs=pl.BlockSpec((1, 1), lambda i, j: (i, j),
                               memory_space=pltpu.MemorySpace.SMEM),
        compiler_params=pltpu.CompilerParams(
            dimension_semantics=("parallel", "parallel")),
    )(xf, tf)
    # tiny final reduction (gr*gc scalars) done in plain jnp
    return jnp.sum(partials) / float(B * C * H * W)


# ----------------------------------------------------------------------------
# Gram matrix:  F @ F^T with F = (B*C, H*W)   -- K-tiled, dot_general (no .T).
# ----------------------------------------------------------------------------
def _gram_kernel(f_ref, o_ref):
    k = pl.program_id(0)

    @pl.when(k == 0)
    def _():
        o_ref[...] = jnp.zeros_like(o_ref)

    blk = f_ref[...]                                   # (R, TK)
    o_ref[...] += lax.dot_general(
        blk, blk,
        dimension_numbers=(((1,), (1,)), ((), ())),    # contract HW axis of both
        preferred_element_type=jnp.float32)


def gram_matrix(feat):
    """feat: (B, C, H, W) -> (B*C, B*C) gram matrix (un-normalized, as in the spec)."""
    B, C, H, W = feat.shape
    R, M = B * C, H * W
    f = feat.reshape(R, M).astype(jnp.float32)
    tk = _pick_tile(M, 128, 2048)

    return pl.pallas_call(
        _gram_kernel,
        out_shape=jax.ShapeDtypeStruct((R, R), jnp.float32),
        grid=(M // tk,),
        in_specs=[pl.BlockSpec((R, tk), lambda k: (0, k))],
        out_specs=pl.BlockSpec((R, R), lambda k: (0, 0)),
        compiler_params=pltpu.CompilerParams(
            dimension_semantics=("arbitrary",)),
    )(f)


# ----------------------------------------------------------------------------
# Style loss:  sum((G(x) - G_target)^2) / (4 * (B*C)^2 * (H*W)^2)
# K-tiled gram accumulation into a VMEM scratch; MSE at the last K step.
# ----------------------------------------------------------------------------
def _style_loss_kernel(f_ref, tg_ref, o_ref, gram_acc, *, inv_denom):
    k = pl.program_id(0)

    @pl.when(k == 0)
    def _():
        gram_acc[...] = jnp.zeros_like(gram_acc)

    blk = f_ref[...]                                   # (R, TK)
    gram_acc[...] += lax.dot_general(
        blk, blk,
        dimension_numbers=(((1,), (1,)), ((), ())),
        preferred_element_type=jnp.float32)

    @pl.when(k == pl.num_programs(0) - 1)
    def _():
        d = gram_acc[...] - tg_ref[...]
        o_ref[0, 0] = jnp.sum(d * d) * inv_denom


def style_loss(feat, target_gram):
    """feat: (B, C, H, W), target_gram: (B*C, B*C) -> scalar loss."""
    B, C, H, W = feat.shape
    R, M = B * C, H * W
    f = feat.reshape(R, M).astype(jnp.float32)
    tk = _pick_tile(M, 128, 2048)   # K streaming; bounds per-step VMEM on v5e/v7x
    inv_denom = 1.0 / (4.0 * float(R) ** 2 * float(M) ** 2)

    out = pl.pallas_call(
        functools.partial(_style_loss_kernel, inv_denom=inv_denom),
        out_shape=jax.ShapeDtypeStruct((1, 1), jnp.float32),
        grid=(M // tk,),
        in_specs=[pl.BlockSpec((R, tk), lambda k: (0, k)),
                  pl.BlockSpec((R, R), lambda k: (0, 0))],
        out_specs=pl.BlockSpec((1, 1), lambda k: (0, 0),
                               memory_space=pltpu.MemorySpace.SMEM),
        scratch_shapes=[pltpu.VMEM((R, R), jnp.float32)],
        compiler_params=pltpu.CompilerParams(
            dimension_semantics=("arbitrary",)),
    )(f, target_gram)
    return out[0, 0]


# ----------------------------------------------------------------------------
# Backbone layers (stand-ins for the external pretrained org_mod).
# ----------------------------------------------------------------------------
class Conv2dLayer:
    def __init__(self, key, in_ch, out_ch, ksize=3):
        wk, bk = jax.random.split(key)
        scale = (in_ch * ksize * ksize) ** -0.5
        self.w = jax.random.normal(wk, (out_ch, in_ch, ksize, ksize), jnp.float32) * scale
        self.b = jax.random.normal(bk, (out_ch,), jnp.float32) * scale

    def __call__(self, x):
        y = lax.conv_general_dilated(
            x, self.w, window_strides=(1, 1), padding="SAME",
            dimension_numbers=("NCHW", "OIHW", "NCHW"))
        return y + self.b[None, :, None, None]


class ReLULayer:
    def __call__(self, x):
        return jnp.maximum(x, 0.0)


def _run_layers(layers, x):
    for l in layers:
        x = l(x)
    return x


# ----------------------------------------------------------------------------
# Loss layers and the StyleTransfer module (mirrors the torch structure).
# ----------------------------------------------------------------------------
class CLoss:
    def __init__(self, org_content_feature_map, w):
        self.org_content_feature_map = org_content_feature_map
        self.w = w
        self.loss = None

    def __call__(self, x):
        self.loss = content_loss(x, self.org_content_feature_map)
        return x


class SLoss:
    def __init__(self, org_style_feature_map, w):
        self.org_style_feature_map = gram_matrix(org_style_feature_map)  # target gram
        self.w = w
        self.loss = None

    def __call__(self, x):
        self.loss = style_loss(x, self.org_style_feature_map)
        return x


class StyleTransfer:
    def __init__(self, org_mod, content_image, style_image, content_ixs, style_ixs,
                 style_weights=None, alpha=1, beta=1):
        self.content_ixs = content_ixs
        self.style_ixs = style_ixs
        self.content_losses = []
        self.style_losses = []
        self.alpha = alpha
        self.beta = beta
        self.style_weights = style_weights
        assert len(self.style_weights) == len(self.style_ixs)
        conv_ix = 0
        self.model = []
        for ix, layer in enumerate(org_mod):
            if isinstance(layer, Conv2dLayer):
                self.model.append(layer)
                if conv_ix in self.content_ixs:
                    content_feature_map = _run_layers(org_mod[:ix + 1], content_image)
                    closs = CLoss(content_feature_map, w=1)
                    self.content_losses.append(closs)
                    self.model.append(closs)
                if conv_ix in self.style_ixs:
                    style_feature_map = _run_layers(org_mod[:ix + 1], style_image)
                    sloss = SLoss(style_feature_map,
                                  w=self.style_weights[self.style_ixs.index(conv_ix)])
                    self.style_losses.append(sloss)
                    self.model.append(sloss)
                if conv_ix >= max(self.style_ixs) and conv_ix >= max(self.content_ixs):
                    break
                else:
                    conv_ix += 1
            elif isinstance(layer, ReLULayer):
                self.model.append(ReLULayer())
            else:
                self.model.append(layer)

    def forward(self, x):
        for layer in self.model:
            x = layer(x)
        return x

    def __call__(self, x):
        return self.forward(x)

    def total_loss(self):
        # tiny weighted scalar combine; plain jnp (no kernel needed)
        s = sum(l.loss * l.w for l in self.style_losses)
        c = sum(l.loss * l.w for l in self.content_losses)
        return self.beta * s + self.alpha * c


# ----------------------------------------------------------------------------
# Pure-JAX reference for checking.
# ----------------------------------------------------------------------------
def _ref_gram(m):
    B, C, H, W = m.shape
    f = m.reshape(B * C, H * W)
    return f @ f.T


def _ref_content_loss(x, t):
    B, C, H, W = x.shape
    return jnp.sum((x - t) ** 2) / (B * C * H * W)


def _ref_style_loss(x, target_gram):
    B, C, H, W = x.shape
    g = _ref_gram(x)
    return jnp.sum((g - target_gram) ** 2) / (4.0 * float(B * C) ** 2 * float(H * W) ** 2)


if __name__ == "__main__":
    key = jax.random.PRNGKey(0)
    B, IN_CH, H, W = 2, 3, 16, 16          # H*W = 256 (lane-friendly), B*C = 16
    alpha, beta = 1.0, 1e3

    ks = jax.random.split(key, 8)
    # small "pretrained" backbone: conv0 -> relu -> conv1 -> relu -> conv2 -> relu
    org_mod = [
        Conv2dLayer(ks[0], IN_CH, 8), ReLULayer(),
        Conv2dLayer(ks[1], 8, 8), ReLULayer(),
        Conv2dLayer(ks[2], 8, 8), ReLULayer(),
    ]
    content_img = jax.random.normal(ks[3], (B, IN_CH, H, W), jnp.float32)
    style_img = jax.random.normal(ks[4], (B, IN_CH, H, W), jnp.float32)
    x_in = jax.random.normal(ks[5], (B, IN_CH, H, W), jnp.float32)

    content_ixs = [1]          # conv index 1 (org_mod[2])
    style_ixs = [0, 2]         # conv indices 0 and 2
    style_weights = [1.0, 0.5]

    st = StyleTransfer(org_mod, content_img, style_img,
                       content_ixs, style_ixs, style_weights, alpha=alpha, beta=beta)

    out = st(x_in)
    total = st.total_loss()
    out = jax.block_until_ready(out)
    total = jax.block_until_ready(total)

    # ---- reference ----
    # conv prefixes (org_mod slice up to and including each tagged conv)
    pre_s0, pre_c0, pre_s1 = org_mod[:1], org_mod[:3], org_mod[:5]
    ref_s0 = _ref_style_loss(_run_layers(pre_s0, x_in), _ref_gram(_run_layers(pre_s0, style_img)))
    ref_c0 = _ref_content_loss(_run_layers(pre_c0, x_in), _run_layers(pre_c0, content_img))
    ref_s1 = _ref_style_loss(_run_layers(pre_s1, x_in), _ref_gram(_run_layers(pre_s1, style_img)))
    ref_total = beta * (1.0 * ref_s0 + 0.5 * ref_s1) + alpha * (1.0 * ref_c0)
    ref_out = _run_layers(pre_s1, x_in)   # model ends right after conv 2 + its style loss
    ref_total = jax.block_until_ready(ref_total)

    assert jnp.allclose(out, ref_out, rtol=1e-5, atol=1e-5), "forward output mismatch"
    assert jnp.isfinite(total), "non-finite total loss"
    assert jnp.allclose(st.style_losses[0].loss, ref_s0, rtol=2e-2, atol=1e-6), \
        (st.style_losses[0].loss, ref_s0)
    assert jnp.allclose(st.style_losses[1].loss, ref_s1, rtol=2e-2, atol=1e-6), \
        (st.style_losses[1].loss, ref_s1)
    assert jnp.allclose(st.content_losses[0].loss, ref_c0, rtol=1e-3, atol=1e-6), \
        (st.content_losses[0].loss, ref_c0)
    assert jnp.allclose(total, ref_total, rtol=2e-2, atol=1e-5), (total, ref_total)

    print("KERNEL_OK")
</pallas_src>

<mosaic_0001>
module attributes {stable_mosaic.version = 11 : i64} {
  func.func @_gram_kernel(%arg0: i32, %arg1: memref<16x256xf32, #tpu.memory_space<vmem>>, %arg2: memref<16x16xf32, #tpu.memory_space<vmem>>) attributes {dimension_semantics = [#tpu.dimension_semantics<arbitrary>], iteration_bounds = array<i64: 1>, scalar_prefetch = 0 : i64, scratch_operands = 0 : i64, tpu.core_type = #tpu.core_type<tc>, window_params = [{transform_indices = @transform_0, window_bounds = array<i64: 16, 256>}, {pipeline_mode = #tpu.pipeline_mode<synchronous>, transform_indices = @transform_1, window_bounds = array<i64: 16, 16>}]} {
    %c0_i32 = arith.constant 0 : i32
    %0 = arith.cmpi eq, %arg0, %c0_i32 : i32
    %1 = arith.extui %0 : i1 to i32
    %c0_i32_0 = arith.constant 0 : i32
    %2 = arith.cmpi ne, %1, %c0_i32_0 : i32
    scf.if %2 {
      %cst_6 = arith.constant 0.000000e+00 : f32
      %8 = vector.broadcast %cst_6 : f32 to vector<16x16xf32>
      %c0_7 = arith.constant 0 : index
      %c0_8 = arith.constant 0 : index
      %9 = vector.load %arg2[%c0_7, %c0_8] : memref<16x16xf32, #tpu.memory_space<vmem>>, vector<16x16xf32>
      tpu.vector_store %arg2[%c0_7, %c0_8], %8 {strides = array<i32>} : memref<16x16xf32, #tpu.memory_space<vmem>>, vector<16x16xf32>,
    } else {
    }
    %c0 = arith.constant 0 : index
    %c0_1 = arith.constant 0 : index
    %3 = vector.load %arg1[%c0, %c0_1] : memref<16x256xf32, #tpu.memory_space<vmem>>, vector<16x256xf32>
    %c0_2 = arith.constant 0 : index
    %c0_3 = arith.constant 0 : index
    %4 = vector.load %arg2[%c0_2, %c0_3] : memref<16x16xf32, #tpu.memory_space<vmem>>, vector<16x16xf32>
    %cst = arith.constant dense<0.000000e+00> : vector<16x16xf32>
    %5 = tpu.matmul %3, %3, %cst {dimension_numbers = #tpu.dot_dimension_numbers<[1], [1], [0], [0], [0, 0, 1, 0], [], []>} : vector<16x256xf32>, vector<16x256xf32>, vector<16x16xf32> -> vector<16x16xf32>
    %6 = arith.addf %4, %5 : vector<16x16xf32>
    %c0_4 = arith.constant 0 : index
    %c0_5 = arith.constant 0 : index
    %7 = vector.load %arg2[%c0_4, %c0_5] : memref<16x16xf32, #tpu.memory_space<vmem>>, vector<16x16xf32>
    tpu.vector_store %arg2[%c0_4, %c0_5], %6 {strides = array<i32>} : memref<16x16xf32, #tpu.memory_space<vmem>>, vector<16x16xf32>,
    return
  }
  func.func @transform_0(%arg0: i32) -> (i32, i32) {
    %c0_i32 = arith.constant 0 : i32
    %c0_i32_0 = arith.constant 0 : i32
    return %c0_i32, %arg0 : i32, i32
  }
  func.func @transform_1(%arg0: i32) -> (i32, i32) {
    %c0_i32 = arith.constant 0 : i32
    %c0_i32_0 = arith.constant 0 : i32
    %c0_i32_1 = arith.constant 0 : i32
    return %c0_i32, %c0_i32_0 : i32, i32
  }
}

</mosaic_0001>

<bundles_post_ra>
// kernel: tpu_custom_call.1
= control target key start
LH: loop header
LB: loop body
LE: loop exit
PB: predicated region body
PF: predicated region fallthrough
CT: control target
= control target key end

     0   :  { %6 = vsyncpa [#allocation3], 0  ;;  %s198_s0 = inlined_call_operand.hbm [shape: f32[16,256], index: 0, kind: input, shape index: {}]   ;;  %s199_s1 = inlined_call_operand.hbm [shape: f32[16,16], index: 1, kind: output, shape index: {}]  }
   0x1   :  { %7 = vsyncpa [#allocation4], 0  ;;  %s12_s8 = sshll.u32 %s198_s0, 4  ;;  %s171_s9 = smov [#allocation2]   ;;  %s13_s8 = int_to_ptr.hbm [resolvable:$true] %s12_s8 }
   0x2   :  { %s14_s10 = sshll.u32 %s171_s9, 4  ;;  %s172_s11 = smov 256   ;;  %s15_s10 = int_to_ptr.vmem [resolvable:$true] %s14_s10 }
   0x3   :  { %s173_s12 = smov 16  }
   0x4   :  { %20 = dma.hbm_to_vmem [thread:$0]  %s13_s8, 512, %s15_s10, [#allocation3], %s172_s11, %s172_s11, %s173_s12  }
   0x5   :  { %167 = dma.done.wait [#allocation3], 512  }
   0x6   :  { %168 = vsyncadd [#allocation3], 4294966784  ;;  %v34_v0 = vld [vmem:[#allocation2 + $0x10] sm:$0xff]  ;;  %v35_v1 = vld [vmem:[#allocation2 + $0x18] sm:$0xff]  ;;  %vm29_vm0 = vcmask 130048   ;;  %v174_v4 = vmov 0.0  }
   0x7   :  { %108 = vmatpush.xpose.msra.mxu2 %v34_v0  ;;  %110 = vmatpush.xpose.msra.mxu3 %v35_v1  ;;  %v32_v2 = vld [vmem:[#allocation2] sm:$0xff]  ;;  %v33_v3 = vld [vmem:[#allocation2 + $0x8] sm:$0xff]  ;;  %30 = vst.msk [vmem:[#allocation5] sm:$0xff] %vm29_vm0, %v174_v4  ;;  %s175_s0 = smov [#allocation5]   ;;  %s95_s16 = sshll.u32 %s199_s1, 4  ;;  %s96_s16 = int_to_ptr.hbm [resolvable:$true] %s95_s16 }
   0x8   :  { %52 = vmatpush.xpose.msra.mxu0 %v34_v0  ;;  %75 = vmatpush.xpose.msra.mxu1 %v35_v1  ;;  %31 = vst.msk [vmem:[#allocation5 + $0x8] sm:$0xff] %vm29_vm0, %v174_v4  ;;  %s93_s13 = sshll.u32 %s175_s0, 4  ;;  %s176_s17 = smov 128   ;;  %s94_s13 = int_to_ptr.vmem [resolvable:$true] %s93_s13 }
   0x9   :  { %s177_s18 = smov 8  }
   0xb   :  { %109 = vmatpush.xpose.msra.mxu2 %v32_v2  ;;  %111 = vmatpush.xpose.msra.mxu3 %v33_v3 }
   0xc   :  { %53 = vmatpush.xpose.msra.mxu0 %v32_v2  ;;  %76 = vmatpush.xpose.msra.mxu1 %v33_v3 }
   0xe   :  { %57 = vmatmul.f32.vlgmr.msra.gmra.mxu2 %v34_v0  ;;  %80 = vmatmul.f32.vlgmr.msra.gmra.mxu3 %v35_v1  ;;  %v36_v6 = vld [vmem:[#allocation5] sm:$0xff] }
   0xf   :  { %54 = vmatmul.f32.vlgmr.msra.gmra.mxu0 %v32_v2  ;;  %77 = vmatmul.f32.vlgmr.msra.gmra.mxu1 %v33_v3  ;;  %v37_v11 = vld [vmem:[#allocation5 + $0x8] sm:$0xff] }
  0x8c   :  { %v55_v5 = vpop.f32.mrf.mxu0  ;;  %v78_v7 = vpop.f32.mrf.mxu1 }
  0x8d   :  { %v79_v8 = vadd.f32 %v78_v7, %v55_v5 }
  0x8f   :  { %v84_v9 = vadd.f32 %v79_v8, %v36_v6 }
  0x91   :  { %v58_v10 = vpop.f32.mrf.mxu2  ;;  %87 = vst.msk [vmem:[#allocation5] sm:$0xff] %vm29_vm0, %v84_v9  ;;  %v81_v12 = vpop.f32.mrf.mxu3 }
  0x92   :  { %v82_v13 = vadd.f32 %v81_v12, %v58_v10 }
  0x94   :  { %v85_v14 = vadd.f32 %v82_v13, %v37_v11 }
  0x96   :  { %88 = vst.msk [vmem:[#allocation5 + $0x8] sm:$0xff] %vm29_vm0, %v85_v14 }
  0x97   :  { %101 = dma.vmem_to_hbm [thread:$0]  %s94_s13, 256, %s96_s16, [#allocation4], %s176_s17, %s176_s17, %s177_s18  }
  0x98   :  { %169 = dma.done.wait [#allocation4], 256  }
  0x99   :  { %170 = vsyncadd [#allocation4], 4294967040 }
  0x9a   :  { %106 = vsyncpa [#allocation3], 1 }
  0x9b   :  { %107 = vsyncpa [#allocation4], 1 }

</bundles_post_ra>
